<compile_context>
chip_gen: v5e
topology: v5e:2x2
jax: 0.10.0
libtpu: 0.0.40
codegen_flags: <defaults>
</compile_context>

<pallas_src>
import functools

import jax
import jax.numpy as jnp
from jax.experimental import pallas as pl
from jax.experimental.pallas import tpu as pltpu

ALPHA = 0.8
GAMMA = 2

_LANE = 128
_MAX_BLOCK_ROWS = 512                      # 512 x 128 f32 = 256 KiB per block


def _bce_partial_kernel(x_ref, t_ref, o_ref):
    """Accumulate elementwise BCE into the (block-shaped) output accumulator."""
    s = pl.program_id(1)

    @pl.when(s == 0)
    def _():
        o_ref[...] = jnp.zeros_like(o_ref)

    x = x_ref[...].astype(jnp.float32)
    t = t_ref[...].astype(jnp.float32)

    # Numerically stable logits-form BCE (one exp + one log per element):
    #   -log(sigmoid(x))     = softplus(-x) = max(-x, 0) + log1p(exp(-|x|))
    #   -log(1 - sigmoid(x)) = softplus( x) = max( x, 0) + log1p(exp(-|x|))
    # Each term is clamped at 100 to match torch.binary_cross_entropy's
    # log clamp at -100.
    log1p_term = jnp.log1p(jnp.exp(-jnp.abs(x)))
    nlog_p = jnp.minimum(jnp.maximum(-x, 0.0) + log1p_term, 100.0)
    nlog_1mp = jnp.minimum(jnp.maximum(x, 0.0) + log1p_term, 100.0)

    o_ref[...] += t * nlog_p + (1.0 - t) * nlog_1mp


@functools.partial(jax.jit, static_argnames=("alpha", "gamma"))
def focal_loss_pallas(inputs, targets, alpha=ALPHA, gamma=GAMMA):
    """loss = alpha * (1 - exp(-BCE))**gamma * BCE, BCE = mean binary CE."""
    n = inputs.size
    x = jnp.ravel(inputs)
    t = jnp.ravel(targets)

    # Choose the block size: up to 512 rows of 128 lanes, shrunk for tiny
    # inputs so we do not pad far past the real data.
    rows_needed = pl.cdiv(n, _LANE)
    block_rows = min(_MAX_BLOCK_ROWS, pl.cdiv(rows_needed, 8) * 8)
    block_elems = block_rows * _LANE

    num_blocks = max(1, pl.cdiv(n, block_elems))
    num_chunks = 2 if num_blocks >= 2 else 1       # v7x: one chunk per TC
    num_blocks = pl.cdiv(num_blocks, num_chunks) * num_chunks
    n_steps = num_blocks // num_chunks

    # Pad with logit=+100, target=1: per-element BCE = log1p(exp(-100)) ~ 0,
    # so padded elements contribute nothing to the sum (no mask stream).
    n_pad = num_blocks * block_elems - n
    x = jnp.pad(x, (0, n_pad), constant_values=100)
    t = jnp.pad(t, (0, n_pad), constant_values=1)

    rows = num_blocks * block_rows
    x2 = x.reshape(rows, _LANE)
    t2 = t.reshape(rows, _LANE)

    in_spec = pl.BlockSpec((block_rows, _LANE),
                           lambda c, s: (c * n_steps + s, 0))

    partials = pl.pallas_call(
        _bce_partial_kernel,
        out_shape=jax.ShapeDtypeStruct((num_chunks * block_rows, _LANE),
                                       jnp.float32),
        grid_spec=pltpu.PrefetchScalarGridSpec(
            num_scalar_prefetch=0,
            grid=(num_chunks, n_steps),
            in_specs=[in_spec, in_spec],
            # Output block revisited across the reduction axis s -> it stays
            # VMEM-resident and acts as the vector accumulator for chunk c.
            out_specs=pl.BlockSpec((block_rows, _LANE), lambda c, s: (c, 0)),
        ),
        compiler_params=pltpu.CompilerParams(
            dimension_semantics=("parallel", "arbitrary"),
        ),
    )(x2, t2)

    # Tiny final reduction + focal transform in plain (fused) XLA.
    bce_mean = jnp.sum(partials) / jnp.float32(n)
    bce_exp = jnp.exp(-bce_mean)
    one_minus = 1.0 - bce_exp
    if gamma == 2:
        pow_term = one_minus * one_minus
    else:
        pow_term = one_minus ** gamma
    return alpha * pow_term * bce_mean


def focal_loss_ref(inputs, targets, alpha=ALPHA, gamma=GAMMA):
    """Pure-JAX reference mirroring the PyTorch module."""
    p = jax.nn.sigmoid(jnp.ravel(inputs).astype(jnp.float32))
    t = jnp.ravel(targets).astype(jnp.float32)
    log_p = jnp.maximum(jnp.log(p), -100.0)
    log_1mp = jnp.maximum(jnp.log(1.0 - p), -100.0)
    bce = jnp.mean(-(t * log_p + (1.0 - t) * log_1mp))
    return alpha * (1.0 - jnp.exp(-bce)) ** gamma * bce


if __name__ == "__main__":
    key = jax.random.PRNGKey(0)
    k1, k2 = jax.random.split(key)

    # NCHW logits + binary targets, small shapes.
    x = jax.random.normal(k1, (2, 4, 16, 16), dtype=jnp.float32)
    t = (jax.random.uniform(k2, (2, 4, 16, 16)) > 0.5).astype(jnp.float32)

    loss = focal_loss_pallas(x, t)
    loss = jax.block_until_ready(loss)

    ref = focal_loss_ref(x, t)
    assert jnp.allclose(loss, ref, rtol=1e-5, atol=1e-6), (loss, ref)
    print("KERNEL_OK")
</pallas_src>

<mosaic_0001>
module attributes {stable_mosaic.version = 11 : i64} {
  func.func @_bce_partial_kernel(%arg0: i32, %arg1: i32, %arg2: memref<16x128xf32, #tpu.memory_space<vmem>>, %arg3: memref<16x128xf32, #tpu.memory_space<vmem>>, %arg4: memref<16x128xf32, #tpu.memory_space<vmem>>) attributes {dimension_semantics = [#tpu.dimension_semantics<parallel>, #tpu.dimension_semantics<arbitrary>], iteration_bounds = array<i64: 1, 1>, scalar_prefetch = 0 : i64, scratch_operands = 0 : i64, tpu.core_type = #tpu.core_type<tc>, window_params = [{transform_indices = @transform_0, window_bounds = array<i64: 16, 128>}, {transform_indices = @transform_1, window_bounds = array<i64: 16, 128>}, {transform_indices = @transform_2, window_bounds = array<i64: 16, 128>}]} {
    %c0_i32 = arith.constant 0 : i32
    %0 = arith.cmpi eq, %arg1, %c0_i32 : i32
    %1 = arith.extui %0 : i1 to i32
    %c0_i32_0 = arith.constant 0 : i32
    %2 = arith.cmpi ne, %1, %c0_i32_0 : i32
    scf.if %2 {
      %cst_14 = arith.constant 0.000000e+00 : f32
      %30 = vector.broadcast %cst_14 : f32 to vector<16x128xf32>
      %c0_15 = arith.constant 0 : index
      %c0_16 = arith.constant 0 : index
      %31 = vector.load %arg4[%c0_15, %c0_16] : memref<16x128xf32, #tpu.memory_space<vmem>>, vector<16x128xf32>
      tpu.vector_store %arg4[%c0_15, %c0_16], %30 {strides = array<i32>} : memref<16x128xf32, #tpu.memory_space<vmem>>, vector<16x128xf32>,
    } else {
    }
    %c0 = arith.constant 0 : index
    %c0_1 = arith.constant 0 : index
    %3 = vector.load %arg2[%c0, %c0_1] : memref<16x128xf32, #tpu.memory_space<vmem>>, vector<16x128xf32>
    %c0_2 = arith.constant 0 : index
    %c0_3 = arith.constant 0 : index
    %4 = vector.load %arg3[%c0_2, %c0_3] : memref<16x128xf32, #tpu.memory_space<vmem>>, vector<16x128xf32>
    %5 = math.absf %3 : vector<16x128xf32>
    %cst = arith.constant 0.000000e+00 : f32
    %6 = vector.broadcast %cst : f32 to vector<16x128xf32>
    %7 = arith.subf %6, %5 : vector<16x128xf32>
    %8 = math.exp %7 : vector<16x128xf32>
    %9 = math.log1p %8 : vector<16x128xf32>
    %cst_4 = arith.constant 0.000000e+00 : f32
    %10 = vector.broadcast %cst_4 : f32 to vector<16x128xf32>
    %11 = arith.subf %10, %3 : vector<16x128xf32>
    %cst_5 = arith.constant 0.000000e+00 : f32
    %12 = vector.broadcast %cst_5 : f32 to vector<16x128xf32>
    %13 = arith.maximumf %11, %12 : vector<16x128xf32>
    %14 = arith.addf %13, %9 : vector<16x128xf32>
    %cst_6 = arith.constant 1.000000e+02 : f32
    %15 = vector.broadcast %cst_6 : f32 to vector<16x128xf32>
    %16 = arith.minimumf %14, %15 : vector<16x128xf32>
    %cst_7 = arith.constant 0.000000e+00 : f32
    %17 = vector.broadcast %cst_7 : f32 to vector<16x128xf32>
    %18 = arith.maximumf %3, %17 : vector<16x128xf32>
    %19 = arith.addf %18, %9 : vector<16x128xf32>
    %cst_8 = arith.constant 1.000000e+02 : f32
    %20 = vector.broadcast %cst_8 : f32 to vector<16x128xf32>
    %21 = arith.minimumf %19, %20 : vector<16x128xf32>
    %c0_9 = arith.constant 0 : index
    %c0_10 = arith.constant 0 : index
    %22 = vector.load %arg4[%c0_9, %c0_10] : memref<16x128xf32, #tpu.memory_space<vmem>>, vector<16x128xf32>
    %23 = arith.mulf %4, %16 : vector<16x128xf32>
    %cst_11 = arith.constant 1.000000e+00 : f32
    %24 = vector.broadcast %cst_11 : f32 to vector<16x128xf32>
    %25 = arith.subf %24, %4 : vector<16x128xf32>
    %26 = arith.mulf %25, %21 : vector<16x128xf32>
    %27 = arith.addf %23, %26 : vector<16x128xf32>
    %28 = arith.addf %22, %27 : vector<16x128xf32>
    %c0_12 = arith.constant 0 : index
    %c0_13 = arith.constant 0 : index
    %29 = vector.load %arg4[%c0_12, %c0_13] : memref<16x128xf32, #tpu.memory_space<vmem>>, vector<16x128xf32>
    tpu.vector_store %arg4[%c0_12, %c0_13], %28 {strides = array<i32>} : memref<16x128xf32, #tpu.memory_space<vmem>>, vector<16x128xf32>,
    return
  }
  func.func @transform_0(%arg0: i32, %arg1: i32) -> (i32, i32) {
    %c1_i32 = arith.constant 1 : i32
    %0 = arith.muli %arg0, %c1_i32 : i32
    %1 = arith.addi %0, %arg1 : i32
    %c0_i32 = arith.constant 0 : i32
    %c0_i32_0 = arith.constant 0 : i32
    return %1, %c0_i32 : i32, i32
  }
  func.func @transform_1(%arg0: i32, %arg1: i32) -> (i32, i32) {
    %c1_i32 = arith.constant 1 : i32
    %0 = arith.muli %arg0, %c1_i32 : i32
    %1 = arith.addi %0, %arg1 : i32
    %c0_i32 = arith.constant 0 : i32
    %c0_i32_0 = arith.constant 0 : i32
    return %1, %c0_i32 : i32, i32
  }
  func.func @transform_2(%arg0: i32, %arg1: i32) -> (i32, i32) {
    %c0_i32 = arith.constant 0 : i32
    %c0_i32_0 = arith.constant 0 : i32
    return %arg0, %c0_i32 : i32, i32
  }
}

</mosaic_0001>

<bundles_post_ra>
// kernel: focal_loss_pallas.1
= control target key start
LH: loop header
LB: loop body
LE: loop exit
PB: predicated region body
PF: predicated region fallthrough
CT: control target
= control target key end

     0   :  { %s177_s0 = inlined_call_operand.vmem [shape: f32[16,128], index: 0, kind: input, shape index: {}]   ;;  %s178_s1 = inlined_call_operand.vmem [shape: f32[16,128], index: 1, kind: input, shape index: {}]   ;;  %s179_s2 = inlined_call_operand.vmem [shape: f32[16,128], index: 2, kind: output, shape index: {}]  }
   0x1   :  { %v61_v0 = vld [vmem:[%s177_s0] sm:$0xff]  ;;  %v62_v1 = vld [vmem:[%s177_s0 + $0x8] sm:$0xff] }
   0x2   :  { %v65_v2 = vand.u32 2147483647, %v61_v0  ;;  %v66_v3 = vand.u32 2147483647, %v62_v1  ;;  %v91_v16 = vsub.f32 0.0, %v61_v0  ;;  %v92_v19 = vsub.f32 0.0, %v62_v1 }
   0x3   :  { %v63_v22 = vld [vmem:[%s178_s1] sm:$0xff]  ;;  %v99_v24 = vmax.f32 %v61_v0, 0.0  ;;  %v100_v29 = vmax.f32 %v62_v1, 0.0  ;;  %v64_v30 = vld [vmem:[%s178_s1 + $0x8] sm:$0xff] }
   0x4   :  { %v67_v4 = vsub.f32 0.0, %v65_v2  ;;  %v68_v5 = vsub.f32 0.0, %v66_v3  ;;  %v93_v23 = vmax.f32 %v91_v16, 0.0  ;;  %v94_v28 = vmax.f32 %v92_v19, 0.0 }
   0x5   :  { %v109_v35 = vsub.f32 1.0, %v63_v22  ;;  %v110_v39 = vsub.f32 1.0, %v64_v30 }
   0x6   :  { %v69_v6 = vmul.f32 1.442695, %v67_v4  ;;  %v71_v7 = vmul.f32 1.442695, %v68_v5 }
   0x8   :  { %136 = vpow2.f32 %v69_v6 }
   0x9   :  { %138 = vpow2.f32 %v71_v7 }
   0xe   :  { %v137_v8 = vpop.eup %136 }
   0xf   :  { %v139_v9 = vpop.eup %138  ;;  %v73_v10 = vadd.f32 1.0, %v137_v8  ;;  %v76_v11 = vmul.f32 -0.5, %v137_v8  ;;  %v79_v15 = vand.u32 2147483647, %v137_v8 }
  0x10   :  { %v82_v12 = vadd.f32 1.0, %v139_v9  ;;  %v85_v13 = vmul.f32 -0.5, %v139_v9  ;;  %v88_v18 = vand.u32 2147483647, %v139_v9 }
  0x11   :  { %140 = vlog2.f32 %v73_v10  ;;  %v77_v14 = vadd.f32 1.0, %v76_v11  ;;  %vm80_vm0 = vcmp.lt.f32.partialorder %v79_v15, 0.0004427343 }
  0x12   :  { %142 = vlog2.f32 %v82_v12  ;;  %v86_v17 = vadd.f32 1.0, %v85_v13  ;;  %vm89_vm1 = vcmp.lt.f32.partialorder %v88_v18, 0.0004427343 }
  0x13   :  { %v78_v20 = vmul.f32 %v137_v8, %v77_v14 }
  0x14   :  { %v87_v25 = vmul.f32 %v139_v9, %v86_v17 }
  0x17   :  { %v141_v21 = vpop.eup %140 }
  0x18   :  { %v143_v26 = vpop.eup %142  ;;  %v75_v27 = vmul.f32 0.6931472, %v141_v21 }
  0x19   :  { %v84_v31 = vmul.f32 0.6931472, %v143_v26 }
  0x1a   :  { %v81_v32 = vsel %vm80_vm0, %v78_v20, %v75_v27 }
  0x1b   :  { %v95_v33 = vadd.f32 %v93_v23, %v81_v32  ;;  %v101_v34 = vadd.f32 %v99_v24, %v81_v32  ;;  %v90_v36 = vsel %vm89_vm1, %v87_v25, %v84_v31 }
  0x1c   :  { %v96_v37 = vadd.f32 %v94_v28, %v90_v36  ;;  %v102_v38 = vadd.f32 %v100_v29, %v90_v36 }
  0x1d   :  { %v97_v40 = vmin.f32 %v95_v33, 100.0  ;;  %v103_v41 = vmin.f32 %v101_v34, 100.0 }
  0x1e   :  { %v98_v42 = vmin.f32 %v96_v37, 100.0  ;;  %v104_v43 = vmin.f32 %v102_v38, 100.0 }
  0x1f   :  { %v107_v44 = vmul.f32 %v97_v40, %v63_v22  ;;  %v111_v45 = vmul.f32 %v109_v35, %v103_v41 }
  0x20   :  { %v108_v46 = vmul.f32 %v98_v42, %v64_v30  ;;  %v112_v47 = vmul.f32 %v110_v39, %v104_v43 }
  0x21   :  { %v113_v48 = vadd.f32 %v111_v45, %v107_v44 }
  0x22   :  { %v114_v49 = vadd.f32 %v112_v47, %v108_v46 }
  0x23   :  { %117 = vst [vmem:[%s179_s2] sm:$0xff] %v113_v48 }
  0x24   :  { %118 = vst [vmem:[%s179_s2 + $0x8] sm:$0xff] %v114_v49 }

</bundles_post_ra>
